<compile_context>
chip_gen: v6e
topology: v6e:2x2x1
jax: 0.10.0
libtpu: 0.0.40
codegen_flags: <defaults>
</compile_context>

<pallas_src>
import jax
import jax.numpy as jnp
from jax import lax
from jax.experimental import pallas as pl
from jax.experimental.pallas import tpu as pltpu


def _vmem_budgets():
    """Per-chip (double-buffered input budget, vmem_limit) in bytes.

    v7x: only 64 MiB VMEM/TC but ~3.2 TB/s HBM -> ~20 MiB blocks.
    v6e: 128 MiB VMEM -> ~24 MiB blocks are free.
    v5e: 8 MiB blocks already amortize the ~0.35us/step overhead (<4%).
    """
    kind = ""
    try:
        kind = jax.devices()[0].device_kind.lower()
    except Exception:  # pragma: no cover - defensive, fall through to default
        pass
    if "v5" in kind:
        return 16 << 20, 32 << 20
    if "v6" in kind:
        return 48 << 20, 96 << 20
    if "7" in kind:
        return 40 << 20, 56 << 20
    return 16 << 20, 32 << 20            # conservative default, fits every gen


def _make_any_one_kernel(tile_f, feat, need_mask):
    """'Row contains an exact 1' reduction.

    Grid: (row tiles [parallel], feature tiles [arbitrary / reduction, last]).
    out_ref is a resident (tile_r, 1) f32 accumulator per row tile.
    """

    def kernel(t_ref, out_ref):
        k = pl.program_id(1)

        @pl.when(k == 0)
        def _():
            out_ref[...] = jnp.zeros_like(out_ref)

        eq = t_ref[...] == jnp.ones((), t_ref.dtype)      # native-dtype compare
        if need_mask:
            # Ragged final feature tile: mask out-of-range columns so
            # unspecified edge-block contents can't spuriously compare == 1.
            col = k * tile_f + lax.broadcasted_iota(jnp.int32, eq.shape, 1)
            eq = jnp.logical_and(eq, col < feat)
        has_one = jnp.any(eq, axis=1, keepdims=True)      # (tile_r, 1) bool
        out_ref[...] = jnp.maximum(out_ref[...], has_one.astype(out_ref.dtype))

    return kernel


def _rows_with_one(t_rows, *, _max_tile_f=None):
    """t_rows: (rows, feat) in native dtype -> (rows, 1) f32 0/1 flags."""
    rows, feat = t_rows.shape
    itemsize = jnp.dtype(t_rows.dtype).itemsize
    budget, vmem_limit = _vmem_budgets()

    # Row tile (parallel axis): multiple of the packed sublane count, capped so
    # (a) two pipeline buffers never blow the VMEM limit at large N and
    # (b) v7x's two TensorCores can split the row stream.
    sub = 8 * max(1, 4 // itemsize)                       # 8 f32 / 16 bf16 / 32 i8
    row_cap = 512
    tile_r = rows if rows <= row_cap else (row_cap // sub) * sub

    # Feature tile (reduction axis): largest lane-aligned tile whose two
    # pipeline buffers fit the per-chip budget. No wrapper-side padding.
    max_tile_f = max(128, (budget // (2 * tile_r * itemsize)) // 128 * 128)
    if _max_tile_f is not None:                           # test-only override
        max_tile_f = min(max_tile_f, _max_tile_f)
    if feat <= max_tile_f:
        tile_f = feat                                     # single full-extent tile
        need_mask = False
    else:
        tile_f = max_tile_f
        need_mask = (feat % tile_f) != 0
    grid = (pl.cdiv(rows, tile_r), pl.cdiv(feat, tile_f))

    return pl.pallas_call(
        _make_any_one_kernel(tile_f, feat, need_mask),
        out_shape=jax.ShapeDtypeStruct((rows, 1), jnp.float32),
        grid_spec=pltpu.PrefetchScalarGridSpec(
            num_scalar_prefetch=0,
            grid=grid,
            in_specs=[pl.BlockSpec((tile_r, tile_f), lambda i, k: (i, k))],
            out_specs=pl.BlockSpec((tile_r, 1), lambda i, k: (i, 0)),  # resident
        ),
        compiler_params=pltpu.CompilerParams(
            dimension_semantics=("parallel", "arbitrary"),
            vmem_limit_bytes=vmem_limit,
        ),
        cost_estimate=pl.CostEstimate(
            flops=rows * feat,
            transcendentals=0,
            bytes_accessed=rows * feat * itemsize + rows * 4,
        ),
    )(t_rows)


def pseudo_label_bce_loss(pseudo_label, targets, weights=None, *, _max_tile_f=None):
    n = targets.shape[0]
    if weights is None:
        weights = jnp.ones((n, 1, 1, 1), jnp.float32)

    # Flatten in native dtype -- no f32 cast of the big array.
    t_flat = targets.reshape(n, -1)
    f = t_flat.shape[1]

    # Sublane-densify small batches: fold features into extra rows so the
    # second-to-last dim fills packed vregs (8 rows f32 / 16 bf16 / 32 int8).
    target_rows = max(8, 32 // jnp.dtype(t_flat.dtype).itemsize)
    fold = 1
    while n * fold < target_rows and f % (fold * 2) == 0:
        fold *= 2
    rows = n * fold
    t_rows = t_flat.reshape(rows, f // fold)              # free metadata reshape

    any_rows = _rows_with_one(t_rows, _max_tile_f=_max_tile_f)   # (rows, 1) f32
    labels = (any_rows.reshape(n, fold).max(axis=1, keepdims=True) > 0.0)
    labels = labels.astype(jnp.float32)                   # (n, 1)

    # Tiny JAX epilogue: numerically stable BCE-with-logits (matches PyTorch)
    #   max(x, 0) - x*y + log(1 + exp(-|x|))
    # and the torch broadcasting quirk: (bce (N,1) * weights (N,1,1,1)).sum()
    #   == sum(bce) * sum(weights).
    x = pseudo_label.astype(jnp.float32).reshape(n, 1)
    bce = jnp.maximum(x, 0.0) - x * labels + jnp.log1p(jnp.exp(-jnp.abs(x)))
    return jnp.sum(bce) * jnp.sum(weights.astype(jnp.float32)) / n


def _reference(pseudo_label, targets, weights):
    n = targets.shape[0]
    if weights is None:
        weights = jnp.ones((n, 1, 1, 1), jnp.float32)
    t = targets.reshape(n, -1)
    labels = jnp.any(t == jnp.ones((), t.dtype), axis=1)
    labels = labels.astype(jnp.float32).reshape(-1, 1)
    x = pseudo_label.astype(jnp.float32)
    bce = jnp.maximum(x, 0.0) - x * labels + jnp.log1p(jnp.exp(-jnp.abs(x)))
    # torch broadcasting: (N,1) * (N,1,1,1) -> (N,1,N,1)
    prod = bce[None, None, :, :] * weights.astype(jnp.float32)[:, :, :, 0][..., None]
    return jnp.sum(prod) / n


if __name__ == "__main__":
    key = jax.random.PRNGKey(0)
    k1, k2, k3, k4 = jax.random.split(key, 4)

    N, C, H, W = 2, 4, 16, 16
    pseudo_label = jax.random.normal(k1, (N, 1), jnp.float32)
    # strictly < 0.9, so no accidental exact 1.0s ...
    targets = jax.random.uniform(k2, (N, C, H, W), jnp.float32) * 0.9
    # ... then force batch 0 to contain an exact 1.0 (positive label)
    targets = targets.at[0, 1, 3, 7].set(1.0)
    weights = jax.random.uniform(k3, (N, 1, 1, 1), jnp.float32) + 0.5

    # f32 targets + weights (single full-extent feature tile)
    loss = jax.block_until_ready(pseudo_label_bce_loss(pseudo_label, targets, weights))
    ref = _reference(pseudo_label, targets, weights)
    assert jnp.allclose(loss, ref, rtol=1e-5, atol=1e-6), (loss, ref)

    # weights=None path (torch.ones fallback)
    loss_none = jax.block_until_ready(pseudo_label_bce_loss(pseudo_label, targets, None))
    ref_none = _reference(pseudo_label, targets, None)
    assert jnp.allclose(loss_none, ref_none, rtol=1e-5, atol=1e-6), (loss_none, ref_none)

    # native-dtype streaming path (bf16 targets, no wrapper cast)
    targets_bf16 = targets.astype(jnp.bfloat16)
    loss_bf16 = jax.block_until_ready(
        pseudo_label_bce_loss(pseudo_label, targets_bf16, weights))
    ref_bf16 = _reference(pseudo_label, targets_bf16, weights)
    assert jnp.allclose(loss_bf16, ref_bf16, rtol=1e-5, atol=1e-6), (loss_bf16, ref_bf16)

    # ragged-feature path: force a small feature tile so the final tile is
    # partial and the in-kernel column mask (pad-free path) is exercised.
    targets_rag = jax.random.uniform(k4, (2, 3, 16, 16), jnp.float32) * 0.9
    targets_rag = targets_rag.at[1, 2, 5, 5].set(1.0)
    loss_rag = jax.block_until_ready(
        pseudo_label_bce_loss(pseudo_label, targets_rag, weights, _max_tile_f=128))
    ref_rag = _reference(pseudo_label, targets_rag, weights)
    assert jnp.allclose(loss_rag, ref_rag, rtol=1e-5, atol=1e-6), (loss_rag, ref_rag)

    print("KERNEL_OK")
</pallas_src>

<mosaic_0001>
module attributes {stable_mosaic.version = 11 : i64} {
  func.func @kernel(%arg0: i32, %arg1: i32, %arg2: memref<8x256xf32, #tpu.memory_space<vmem>>, %arg3: memref<8x1xf32, #tpu.memory_space<vmem>>) attributes {dimension_semantics = [#tpu.dimension_semantics<parallel>, #tpu.dimension_semantics<arbitrary>], iteration_bounds = array<i64: 1, 1>, scalar_prefetch = 0 : i64, scratch_operands = 0 : i64, tpu.core_type = #tpu.core_type<tc>, window_params = [{transform_indices = @transform_0, window_bounds = array<i64: 8, 256>}, {transform_indices = @transform_1, window_bounds = array<i64: 8, 1>}]} {
    %c0_i32 = arith.constant 0 : i32
    %0 = arith.cmpi eq, %arg1, %c0_i32 : i32
    %1 = arith.extui %0 : i1 to i32
    %c0_i32_0 = arith.constant 0 : i32
    %2 = arith.cmpi ne, %1, %c0_i32_0 : i32
    scf.if %2 {
      %cst_10 = arith.constant 0.000000e+00 : f32
      %18 = vector.broadcast %cst_10 : f32 to vector<8x1xf32>
      %c0_11 = arith.constant 0 : index
      %c0_12 = arith.constant 0 : index
      %19 = vector.load %arg3[%c0_11, %c0_12] : memref<8x1xf32, #tpu.memory_space<vmem>>, vector<8x1xf32>
      tpu.vector_store %arg3[%c0_11, %c0_12], %18 {strides = array<i32>} : memref<8x1xf32, #tpu.memory_space<vmem>>, vector<8x1xf32>,
    } else {
    }
    %c0 = arith.constant 0 : index
    %c0_1 = arith.constant 0 : index
    %3 = vector.load %arg2[%c0, %c0_1] : memref<8x256xf32, #tpu.memory_space<vmem>>, vector<8x256xf32>
    %cst = arith.constant 1.000000e+00 : f32
    %4 = vector.broadcast %cst : f32 to vector<8x256xf32>
    %5 = arith.cmpf oeq, %3, %4 : vector<8x256xf32>
    %cst_2 = arith.constant 1.000000e+00 : f32
    %cst_3 = arith.constant 0.000000e+00 : f32
    %6 = vector.broadcast %cst_2 : f32 to vector<8x256xf32>
    %7 = vector.broadcast %cst_3 : f32 to vector<8x256xf32>
    %8 = arith.select %5, %6, %7 : vector<8x256xi1>, vector<8x256xf32>
    %cst_4 = arith.constant dense<0xFF800000> : vector<8xf32>
    %9 = vector.multi_reduction <maximumf>, %8, %cst_4 [1] : vector<8x256xf32> to vector<8xf32>
    %cst_5 = arith.constant 0.000000e+00 : f32
    %10 = vector.broadcast %cst_5 : f32 to vector<8xf32>
    %11 = arith.cmpf ogt, %9, %10 : vector<8xf32>
    %12 = vector.shape_cast %11 : vector<8xi1> to vector<8x1xi1>
    %c0_6 = arith.constant 0 : index
    %c0_7 = arith.constant 0 : index
    %13 = vector.load %arg3[%c0_6, %c0_7] : memref<8x1xf32, #tpu.memory_space<vmem>>, vector<8x1xf32>
    %14 = arith.extui %12 : vector<8x1xi1> to vector<8x1xi32>
    %15 = arith.sitofp %14 : vector<8x1xi32> to vector<8x1xf32>
    %16 = arith.maximumf %13, %15 : vector<8x1xf32>
    %c0_8 = arith.constant 0 : index
    %c0_9 = arith.constant 0 : index
    %17 = vector.load %arg3[%c0_8, %c0_9] : memref<8x1xf32, #tpu.memory_space<vmem>>, vector<8x1xf32>
    tpu.vector_store %arg3[%c0_8, %c0_9], %16 {strides = array<i32>} : memref<8x1xf32, #tpu.memory_space<vmem>>, vector<8x1xf32>,
    return
  }
  func.func @transform_0(%arg0: i32, %arg1: i32) -> (i32, i32) {
    %c0_i32 = arith.constant 0 : i32
    return %arg0, %arg1 : i32, i32
  }
  func.func @transform_1(%arg0: i32, %arg1: i32) -> (i32, i32) {
    %c0_i32 = arith.constant 0 : i32
    %c0_i32_0 = arith.constant 0 : i32
    return %arg0, %c0_i32 : i32, i32
  }
}

</mosaic_0001>

<bundles_post_ra>
// kernel: tpu_custom_call.1
= control target key start
LH: loop header
LB: loop body
LE: loop exit
PB: predicated region body
PF: predicated region fallthrough
CT: control target
= control target key end

     0   :  { %6 = vsyncpa [#allocation3], 0  ;;  %s72_s6 = smov [#allocation2]   ;;  %s98_s0 = inlined_call_operand.hbm [shape: f32[8,256], index: 0, kind: input, shape index: {}]   ;;  %s99_s1 = inlined_call_operand.vmem [shape: f32[8,1], index: 1, kind: output, shape index: {}]  }
   0x1   :  { %s13_s7 = sshll.u32 %s72_s6, 4  ;;  %s14_s7 = int_to_ptr.vmem [resolvable:$true] %s13_s7 }
   0x2   :  { %s58_s8 = scalar_lea.vmem %s14_s7, 256  ;;  %p63_p1 = scmp.lt.s32.totalorder %s14_s7, %s14_s7 }
   0x3   :  { %p59_p0 = scmp.ne.s32.totalorder %s14_s7, %s58_s8  ;;  %p64_p2 = scmp.lt.s32.totalorder %s58_s8, %s58_s8 }
   0x5   :  { %p65_p3 = por %p64_p2, %p63_p1 }
   0x7   :  { %p66_p4 = pnand %p65_p3, %p59_p0 }
   0x9   :  { %69 = shalt.err (!%p66_p4)
}
   0xa   :  { %16 = dma.hbm_to_vmem [thread:$0]  %s98_s0, 256, %s14_s7, [#allocation3]  }
   0xb   :  { %70 = dma.done.wait [#allocation3], 256  }
   0xc   :  { %71 = vsyncadd [#allocation3], 4294967040  ;;  %vm24_vm0 = vcmask 7168   ;;  %v73_v0 = vmov 0.0   ;;  %v26_v1 = vld [vmem:[#allocation2] sm:$0xff]  ;;  %v27_v2 = vld [vmem:[#allocation2 + $0x8] sm:$0xff] }
   0xd   :  { %25 = vst.msk [vmem:[%s99_s1] sm:$0xff] %vm24_vm0, %v73_v0  ;;  %vm28_vm1 = vcmp.eq.f32.partialorder %v26_v1, 1.0  ;;  %vm29_vm2 = vcmp.eq.f32.partialorder %v27_v2, 1.0 }
   0xe   :  { %v30_v3 = vsel %vm28_vm1, 1.0, %v73_v0  ;;  %v31_v4 = vsel %vm29_vm2, 1.0, %v73_v0 }
   0xf   :  { %v32_v5 = vmax.f32 %v30_v3, %v31_v4 }
  0x11   :  { %33 = vmax.xlane.f32.xlu0 %v32_v5 }
  0x14   :  { %v36_v7 = vld [vmem:[%s99_s1] sm:$0xff] }
  0x9a   :  { %v34_v6 = vpop.xlane.xlu0 %33 }
  0x9b   :  { %vm35_vm3 = vcmp.gt.f32.partialorder %v34_v6, 0.0 }
  0x9c   :  { %v47_v8 = vsel %vm35_vm3, 1.0, %v73_v0 }
  0x9d   :  { %v39_v9 = vmax.f32 %v36_v7, %v47_v8 }
  0x9f   :  { %41 = vst.msk [vmem:[%s99_s1] sm:$0xff] %vm24_vm0, %v39_v9 }
  0xa0   :  { %46 = vsyncpa [#allocation3], 1 }

</bundles_post_ra>
